<compile_context>
chip_gen: v7x
topology: tpu7x:2x2x1
jax: 0.10.0
libtpu: 0.0.40
codegen_flags: <defaults>
</compile_context>

<pallas_src>
import math
import functools

import jax
import jax.numpy as jnp
from jax import lax
from jax.experimental import pallas as pl
from jax.experimental.pallas import tpu as pltpu


def cross_attention_kernel(x_ref, ctx_ref,
                           wq_ref, bq_ref,
                           wk_ref, bk_ref,
                           wv_ref, bv_ref,
                           wo_ref, bo_ref,
                           o_ref,
                           acc_ref,
                           *, lkv, lkv_pad):
    """One (batch, q-tile, head) grid step.

    x_ref:  (TQ, D)          ctx_ref: (Lkv_pad, Dc)
    wq_ref: (H, D, dh)       bq_ref:  (H, 1, dh)   (1/sqrt(dh) pre-folded)
    wk_ref: (H, Dc, dh)      bk_ref:  (H, 1, dh)
    wv_ref: (H, Dc, dh)      bv_ref:  (H, 1, dh)
    wo_ref: (H, dh, D)       bo_ref:  (1, D)
    o_ref:  (TQ, D)          acc_ref: (TQ, D) f32 scratch (persists over heads)
    """
    h = pl.program_id(2)
    cd = x_ref.dtype                      # MXU operand dtype (bf16 in prod)

    x = x_ref[...]                        # (TQ, D)
    ctx = ctx_ref[...]                    # (Lkv_pad, Dc)

    # Per-head projections: 2-D MXU matmuls with f32 accumulation.
    q = jnp.dot(x, wq_ref[h], preferred_element_type=jnp.float32) + bq_ref[h]
    k = jnp.dot(ctx, wk_ref[h], preferred_element_type=jnp.float32) + bk_ref[h]
    v = jnp.dot(ctx, wv_ref[h], preferred_element_type=jnp.float32) + bv_ref[h]

    # Scores q @ k^T without materializing a transpose (contract last dims).
    s = lax.dot_general(q.astype(cd), k.astype(cd),
                        (((1,), (1,)), ((), ())),
                        preferred_element_type=jnp.float32)    # (TQ, Lkv_pad)

    if lkv_pad > lkv:  # static at trace time: mask zero-padded key columns
        col = lax.broadcasted_iota(jnp.int32, (1, lkv_pad), 1)
        s = jnp.where(col < lkv, s, -1e30)

    # Numerically-stable softmax; stats stay in f32 (also correct on v5e).
    s = s - jnp.max(s, axis=-1, keepdims=True)
    e = jnp.exp(s)
    p = e * pl.reciprocal(jnp.sum(e, axis=-1, keepdims=True), approx=True)

    attn = jnp.dot(p.astype(cd), v.astype(cd),
                   preferred_element_type=jnp.float32)         # (TQ, dh)

    @pl.when(h == 0)
    def _init():
        acc_ref[...] = jnp.zeros_like(acc_ref)

    # This head's output-projection contribution, accumulated over heads.
    acc_ref[...] += jnp.dot(attn.astype(cd), wo_ref[h],
                            preferred_element_type=jnp.float32)

    @pl.when(h == pl.num_programs(2) - 1)
    def _finalize():
        o_ref[...] = (acc_ref[...] + bo_ref[...]).astype(o_ref.dtype)


def cross_attention(x, context, params, n_heads, *, q_tile=256):
    """x: (B, Lq, d_embed); context: (B, Lkv, d_cross).
    params follow the PyTorch Linear convention: W (out, in), b (1, out)."""
    B, Lq, D = x.shape
    _, Lkv, Dc = context.shape
    assert D % n_heads == 0
    H, dh = n_heads, D // n_heads
    dtype = x.dtype

    # ---- one-time wrapper-side layout plumbing (never done in-kernel) ----
    scale = 1.0 / math.sqrt(dh)

    def split_w(w):   # (d_out, d_in) -> per-head, pre-transposed (H, d_in, dh)
        d_out, d_in = w.shape
        return jnp.transpose(w.reshape(H, dh, d_in), (0, 2, 1)).astype(dtype)

    def split_b(b):   # (1, d_out) or (d_out,) -> (H, 1, dh)
        return jnp.reshape(b, (H, dh))[:, None, :].astype(dtype)

    wq = split_w(params["wq"] * scale)            # fold 1/sqrt(dh) into Q proj
    bq = split_b(params["bq"] * scale)
    wk, bk = split_w(params["wk"]), split_b(params["bk"])
    wv, bv = split_w(params["wv"]), split_b(params["bv"])
    wo = jnp.reshape(params["wo"].T, (H, dh, D)).astype(dtype)  # (H, dh, d_out)
    bo = jnp.reshape(params["bo"], (1, D)).astype(dtype)

    # Lane-dense scores / PV matmul: pad Lkv up to a multiple of 128.
    lkv_pad = pl.cdiv(Lkv, 128) * 128
    ctx = context.astype(dtype)
    if lkv_pad != Lkv:
        ctx = jnp.pad(ctx, ((0, 0), (0, lkv_pad - Lkv), (0, 0)))

    # Query tiling bounds VMEM at SD sizes; fall back to the full sequence
    # when Lq is small / not divisible by the tile.
    tq = q_tile if (Lq % q_tile == 0) else Lq
    n_q = Lq // tq

    kernel = functools.partial(cross_attention_kernel, lkv=Lkv, lkv_pad=lkv_pad)

    def const_spec(a):  # constant index_map -> weights DMA'd once, revisited
        nd = a.ndim
        return pl.BlockSpec(a.shape, lambda b, qi, h: (0,) * nd)

    # Advisory cost estimate so XLA schedules surrounding ops correctly.
    nbytes = lambda a: int(a.size * a.dtype.itemsize)
    n_steps = B * n_q * H
    per_step_flops = 2 * (tq * D * dh              # Q projection (this head)
                          + 2 * lkv_pad * Dc * dh  # K and V projections
                          + 2 * tq * lkv_pad * dh  # q@k^T and p@v
                          + tq * dh * D)           # out-projection contribution
    cost = pl.CostEstimate(
        flops=int(n_steps * per_step_flops),
        transcendentals=int(n_steps * tq * lkv_pad),
        bytes_accessed=int(2 * nbytes(x) + nbytes(ctx)
                           + sum(nbytes(a) for a in (wq, bq, wk, bk, wv, bv, wo, bo))),
    )

    return pl.pallas_call(
        kernel,
        out_shape=jax.ShapeDtypeStruct((B, Lq, D), dtype),
        grid_spec=pltpu.PrefetchScalarGridSpec(
            num_scalar_prefetch=0,
            grid=(B, n_q, H),
            in_specs=[
                pl.BlockSpec((None, tq, D), lambda b, qi, h: (b, qi, 0)),
                pl.BlockSpec((None, lkv_pad, Dc), lambda b, qi, h: (b, 0, 0)),
                const_spec(wq), const_spec(bq),
                const_spec(wk), const_spec(bk),
                const_spec(wv), const_spec(bv),
                const_spec(wo), const_spec(bo),
            ],
            out_specs=pl.BlockSpec((None, tq, D), lambda b, qi, h: (b, qi, 0)),
            scratch_shapes=[pltpu.VMEM((tq, D), jnp.float32)],
        ),
        compiler_params=pltpu.CompilerParams(
            dimension_semantics=("parallel", "parallel", "arbitrary"),
            vmem_limit_bytes=48 * 1024 * 1024,   # budgeted for v7x's 64 MiB VMEM
        ),
        cost_estimate=cost,
    )(x, ctx, wq, bq, wk, bk, wv, bv, wo, bo)


def init_params(key, d_embed, d_cross):
    """Deterministic synthetic parameters (PyTorch Linear shapes: (out, in))."""
    ks = jax.random.split(key, 8)
    def lin(kw, kb, d_out, d_in):
        bound = 1.0 / math.sqrt(d_in)
        w = jax.random.uniform(kw, (d_out, d_in), jnp.float32, -bound, bound)
        b = jax.random.uniform(kb, (1, d_out), jnp.float32, -bound, bound)
        return w, b
    wq, bq = lin(ks[0], ks[1], d_embed, d_embed)
    wk, bk = lin(ks[2], ks[3], d_embed, d_cross)
    wv, bv = lin(ks[4], ks[5], d_embed, d_cross)
    wo, bo = lin(ks[6], ks[7], d_embed, d_embed)
    return dict(wq=wq, bq=bq, wk=wk, bk=bk, wv=wv, bv=bv, wo=wo, bo=bo)


def cross_attention_ref(x, context, params, n_heads):
    """Pure-JAX reference mirroring the PyTorch forward, for validation."""
    B, Lq, D = x.shape
    dh = D // n_heads
    q = x @ params["wq"].T + params["bq"][0]
    k = context @ params["wk"].T + params["bk"][0]
    v = context @ params["wv"].T + params["bv"][0]
    def split(t):
        Bn, L, _ = t.shape
        return t.reshape(Bn, L, n_heads, dh).transpose(0, 2, 1, 3)
    qh, kh, vh = split(q), split(k), split(v)
    s = jnp.einsum('bhqd,bhkd->bhqk', qh, kh) / math.sqrt(dh)
    p = jax.nn.softmax(s, axis=-1)
    o = jnp.einsum('bhqk,bhkd->bhqd', p, vh)
    o = o.transpose(0, 2, 1, 3).reshape(B, Lq, D)
    return o @ params["wo"].T + params["bo"][0]


if __name__ == "__main__":
    B, Lq, Lkv = 2, 8, 8
    n_heads, d_embed, d_cross = 4, 32, 16

    key = jax.random.PRNGKey(0)
    kx, kc, kp = jax.random.split(key, 3)
    x = jax.random.normal(kx, (B, Lq, d_embed), jnp.float32)
    context = jax.random.normal(kc, (B, Lkv, d_cross), jnp.float32)
    params = init_params(kp, d_embed, d_cross)

    ref = cross_attention_ref(x, context, params, n_heads)

    # f32 path (strict check; small slack for the approx EUP reciprocal).
    out = jax.block_until_ready(cross_attention(x, context, params, n_heads))
    assert out.shape == (B, Lq, d_embed) and out.dtype == x.dtype
    assert jnp.allclose(out, ref, atol=2e-2, rtol=2e-2), "f32 mismatch vs reference"

    # bf16 path (production MXU operand dtype; softmax stats stay f32).
    xb = x.astype(jnp.bfloat16)
    cb = context.astype(jnp.bfloat16)
    pb = {k: v.astype(jnp.bfloat16) for k, v in params.items()}
    out_b = jax.block_until_ready(cross_attention(xb, cb, pb, n_heads))
    assert out_b.shape == (B, Lq, d_embed) and out_b.dtype == jnp.bfloat16
    assert jnp.allclose(out_b.astype(jnp.float32), ref, atol=0.15, rtol=0.15), \
        "bf16 mismatch vs reference"

    print("KERNEL_OK")
</pallas_src>

<mosaic_0001>
module attributes {stable_mosaic.version = 11 : i64} {
  func.func @cross_attention_kernel(%arg0: i32, %arg1: i32, %arg2: i32, %arg3: memref<1x8x32xf32, #tpu.memory_space<vmem>>, %arg4: memref<1x128x16xf32, #tpu.memory_space<vmem>>, %arg5: memref<4x32x8xf32, #tpu.memory_space<vmem>>, %arg6: memref<4x1x8xf32, #tpu.memory_space<vmem>>, %arg7: memref<4x16x8xf32, #tpu.memory_space<vmem>>, %arg8: memref<4x1x8xf32, #tpu.memory_space<vmem>>, %arg9: memref<4x16x8xf32, #tpu.memory_space<vmem>>, %arg10: memref<4x1x8xf32, #tpu.memory_space<vmem>>, %arg11: memref<4x8x32xf32, #tpu.memory_space<vmem>>, %arg12: memref<1x32xf32, #tpu.memory_space<vmem>>, %arg13: memref<1x8x32xf32, #tpu.memory_space<vmem>>, %arg14: memref<8x32xf32, #tpu.memory_space<vmem>>) attributes {dimension_semantics = [#tpu.dimension_semantics<parallel>, #tpu.dimension_semantics<parallel>, #tpu.dimension_semantics<arbitrary>], iteration_bounds = array<i64: 2, 1, 4>, scalar_prefetch = 0 : i64, scratch_operands = 1 : i64, tpu.core_type = #tpu.core_type<tc>, window_params = [{transform_indices = @transform_0, window_bounds = array<i64: 1, 8, 32>}, {transform_indices = @transform_1, window_bounds = array<i64: 1, 128, 16>}, {pipeline_mode = #tpu.pipeline_mode<synchronous>, transform_indices = @transform_2, window_bounds = array<i64: 4, 32, 8>}, {pipeline_mode = #tpu.pipeline_mode<synchronous>, transform_indices = @transform_3, window_bounds = array<i64: 4, 1, 8>}, {pipeline_mode = #tpu.pipeline_mode<synchronous>, transform_indices = @transform_4, window_bounds = array<i64: 4, 16, 8>}, {pipeline_mode = #tpu.pipeline_mode<synchronous>, transform_indices = @transform_5, window_bounds = array<i64: 4, 1, 8>}, {pipeline_mode = #tpu.pipeline_mode<synchronous>, transform_indices = @transform_6, window_bounds = array<i64: 4, 16, 8>}, {pipeline_mode = #tpu.pipeline_mode<synchronous>, transform_indices = @transform_7, window_bounds = array<i64: 4, 1, 8>}, {pipeline_mode = #tpu.pipeline_mode<synchronous>, transform_indices = @transform_8, window_bounds = array<i64: 4, 8, 32>}, {pipeline_mode = #tpu.pipeline_mode<synchronous>, transform_indices = @transform_9, window_bounds = array<i64: 1, 32>}, {transform_indices = @transform_10, window_bounds = array<i64: 1, 8, 32>}]} {
    %c0 = arith.constant 0 : index
    %c0_0 = arith.constant 0 : index
    %c0_1 = arith.constant 0 : index
    %0 = vector.load %arg3[%c0, %c0_0, %c0_1] : memref<1x8x32xf32, #tpu.memory_space<vmem>>, vector<1x8x32xf32>
    %1 = vector.shape_cast %0 : vector<1x8x32xf32> to vector<8x32xf32>
    %c0_2 = arith.constant 0 : index
    %c0_3 = arith.constant 0 : index
    %c0_4 = arith.constant 0 : index
    %2 = vector.load %arg4[%c0_2, %c0_3, %c0_4] : memref<1x128x16xf32, #tpu.memory_space<vmem>>, vector<1x128x16xf32>
    %3 = vector.shape_cast %2 : vector<1x128x16xf32> to vector<128x16xf32>
    %4 = arith.index_cast %arg2 : i32 to index
    %c0_5 = arith.constant 0 : index
    %c0_6 = arith.constant 0 : index
    %5 = vector.load %arg5[%4, %c0_5, %c0_6] : memref<4x32x8xf32, #tpu.memory_space<vmem>>, vector<1x32x8xf32>
    %6 = vector.shape_cast %5 : vector<1x32x8xf32> to vector<32x8xf32>
    %cst = arith.constant dense<0.000000e+00> : vector<8x8xf32>
    %7 = tpu.matmul %1, %6, %cst {dimension_numbers = #tpu.dot_dimension_numbers<[1], [0], [0], [1], [0, 0, 1, 1], [], []>} : vector<8x32xf32>, vector<32x8xf32>, vector<8x8xf32> -> vector<8x8xf32>
    %8 = arith.index_cast %arg2 : i32 to index
    %c0_7 = arith.constant 0 : index
    %c0_8 = arith.constant 0 : index
    %9 = vector.load %arg6[%8, %c0_7, %c0_8] : memref<4x1x8xf32, #tpu.memory_space<vmem>>, vector<1x1x8xf32>
    %10 = vector.shape_cast %9 : vector<1x1x8xf32> to vector<1x8xf32>
    %11 = vector.broadcast %10 : vector<1x8xf32> to vector<8x8xf32>
    %12 = arith.addf %7, %11 : vector<8x8xf32>
    %13 = arith.index_cast %arg2 : i32 to index
    %c0_9 = arith.constant 0 : index
    %c0_10 = arith.constant 0 : index
    %14 = vector.load %arg7[%13, %c0_9, %c0_10] : memref<4x16x8xf32, #tpu.memory_space<vmem>>, vector<1x16x8xf32>
    %15 = vector.shape_cast %14 : vector<1x16x8xf32> to vector<16x8xf32>
    %cst_11 = arith.constant dense<0.000000e+00> : vector<128x8xf32>
    %16 = tpu.matmul %3, %15, %cst_11 {dimension_numbers = #tpu.dot_dimension_numbers<[1], [0], [0], [1], [0, 0, 1, 1], [], []>} : vector<128x16xf32>, vector<16x8xf32>, vector<128x8xf32> -> vector<128x8xf32>
    %17 = arith.index_cast %arg2 : i32 to index
    %c0_12 = arith.constant 0 : index
    %c0_13 = arith.constant 0 : index
    %18 = vector.load %arg8[%17, %c0_12, %c0_13] : memref<4x1x8xf32, #tpu.memory_space<vmem>>, vector<1x1x8xf32>
    %19 = vector.shape_cast %18 : vector<1x1x8xf32> to vector<1x8xf32>
    %20 = vector.broadcast %19 : vector<1x8xf32> to vector<128x8xf32>
    %21 = arith.addf %16, %20 : vector<128x8xf32>
    %22 = arith.index_cast %arg2 : i32 to index
    %c0_14 = arith.constant 0 : index
    %c0_15 = arith.constant 0 : index
    %23 = vector.load %arg9[%22, %c0_14, %c0_15] : memref<4x16x8xf32, #tpu.memory_space<vmem>>, vector<1x16x8xf32>
    %24 = vector.shape_cast %23 : vector<1x16x8xf32> to vector<16x8xf32>
    %cst_16 = arith.constant dense<0.000000e+00> : vector<128x8xf32>
    %25 = tpu.matmul %3, %24, %cst_16 {dimension_numbers = #tpu.dot_dimension_numbers<[1], [0], [0], [1], [0, 0, 1, 1], [], []>} : vector<128x16xf32>, vector<16x8xf32>, vector<128x8xf32> -> vector<128x8xf32>
    %26 = arith.index_cast %arg2 : i32 to index
    %c0_17 = arith.constant 0 : index
    %c0_18 = arith.constant 0 : index
    %27 = vector.load %arg10[%26, %c0_17, %c0_18] : memref<4x1x8xf32, #tpu.memory_space<vmem>>, vector<1x1x8xf32>
    %28 = vector.shape_cast %27 : vector<1x1x8xf32> to vector<1x8xf32>
    %29 = vector.broadcast %28 : vector<1x8xf32> to vector<128x8xf32>
    %30 = arith.addf %25, %29 : vector<128x8xf32>
    %cst_19 = arith.constant dense<0.000000e+00> : vector<8x128xf32>
    %31 = tpu.matmul %12, %21, %cst_19 {dimension_numbers = #tpu.dot_dimension_numbers<[1], [1], [0], [0], [0, 0, 1, 0], [], []>} : vector<8x8xf32>, vector<128x8xf32>, vector<8x128xf32> -> vector<8x128xf32>
    %32 = tpu.iota {dimensions = array<i32: 1>} : vector<1x128xi32>
    %c8_i32 = arith.constant 8 : i32
    %33 = vector.broadcast %c8_i32 : i32 to vector<1x128xi32>
    %34 = arith.cmpi slt, %32, %33 : vector<1x128xi32>
    %cst_20 = arith.constant -1.000000e+30 : f32
    %35 = vector.shape_cast %34 : vector<1x128xi1> to vector<1x128xi1>
    %36 = vector.broadcast %35 : vector<1x128xi1> to vector<8x128xi1>
    %37 = vector.broadcast %cst_20 : f32 to vector<8x128xf32>
    %38 = arith.select %36, %31, %37 : vector<8x128xi1>, vector<8x128xf32>
    %cst_21 = arith.constant dense<0xFF800000> : vector<8xf32>
    %39 = vector.multi_reduction <maximumf>, %38, %cst_21 [1] : vector<8x128xf32> to vector<8xf32>
    %40 = vector.shape_cast %39 : vector<8xf32> to vector<8x1xf32>
    %41 = vector.broadcast %40 : vector<8x1xf32> to vector<8x128xf32>
    %42 = arith.subf %38, %41 : vector<8x128xf32>
    %43 = math.exp %42 : vector<8x128xf32>
    %cst_22 = arith.constant dense<0.000000e+00> : vector<8xf32>
    %44 = vector.multi_reduction <add>, %43, %cst_22 [1] : vector<8x128xf32> to vector<8xf32>
    %45 = vector.shape_cast %44 : vector<8xf32> to vector<8x1xf32>
    %46 = tpu.reciprocal %45 {approx = true} : vector<8x1xf32> -> vector<8x1xf32>
    %47 = vector.broadcast %46 : vector<8x1xf32> to vector<8x128xf32>
    %48 = arith.mulf %43, %47 : vector<8x128xf32>
    %cst_23 = arith.constant dense<0.000000e+00> : vector<8x8xf32>
    %49 = tpu.matmul %48, %30, %cst_23 {dimension_numbers = #tpu.dot_dimension_numbers<[1], [0], [0], [1], [0, 0, 1, 1], [], []>} : vector<8x128xf32>, vector<128x8xf32>, vector<8x8xf32> -> vector<8x8xf32>
    %c0_i32 = arith.constant 0 : i32
    %50 = arith.cmpi eq, %arg2, %c0_i32 : i32
    %51 = arith.extui %50 : i1 to i32
    %c0_i32_24 = arith.constant 0 : i32
    %52 = arith.cmpi ne, %51, %c0_i32_24 : i32
    scf.if %52 {
      %cst_33 = arith.constant 0.000000e+00 : f32
      %63 = vector.broadcast %cst_33 : f32 to vector<8x32xf32>
      %c0_34 = arith.constant 0 : index
      %c0_35 = arith.constant 0 : index
      %64 = vector.load %arg14[%c0_34, %c0_35] : memref<8x32xf32, #tpu.memory_space<vmem>>, vector<8x32xf32>
      tpu.vector_store %arg14[%c0_34, %c0_35], %63 {strides = array<i32>} : memref<8x32xf32, #tpu.memory_space<vmem>>, vector<8x32xf32>,
    } else {
    }
    %c0_25 = arith.constant 0 : index
    %c0_26 = arith.constant 0 : index
    %53 = vector.load %arg14[%c0_25, %c0_26] : memref<8x32xf32, #tpu.memory_space<vmem>>, vector<8x32xf32>
    %54 = arith.index_cast %arg2 : i32 to index
    %c0_27 = arith.constant 0 : index
    %c0_28 = arith.constant 0 : index
    %55 = vector.load %arg11[%54, %c0_27, %c0_28] : memref<4x8x32xf32, #tpu.memory_space<vmem>>, vector<1x8x32xf32>
    %56 = vector.shape_cast %55 : vector<1x8x32xf32> to vector<8x32xf32>
    %cst_29 = arith.constant dense<0.000000e+00> : vector<8x32xf32>
    %57 = tpu.matmul %49, %56, %cst_29 {dimension_numbers = #tpu.dot_dimension_numbers<[1], [0], [0], [1], [0, 0, 1, 1], [], []>} : vector<8x8xf32>, vector<8x32xf32>, vector<8x32xf32> -> vector<8x32xf32>
    %58 = arith.addf %53, %57 : vector<8x32xf32>
    %c0_30 = arith.constant 0 : index
    %c0_31 = arith.constant 0 : index
    %59 = vector.load %arg14[%c0_30, %c0_31] : memref<8x32xf32, #tpu.memory_space<vmem>>, vector<8x32xf32>
    tpu.vector_store %arg14[%c0_30, %c0_31], %58 {strides = array<i32>} : memref<8x32xf32, #tpu.memory_space<vmem>>, vector<8x32xf32>,
    %c3_i32 = arith.constant 3 : i32
    %60 = arith.cmpi eq, %arg2, %c3_i32 : i32
    %61 = arith.extui %60 : i1 to i32
    %c0_i32_32 = arith.constant 0 : i32
    %62 = arith.cmpi ne, %61, %c0_i32_32 : i32
    scf.if %62 {
      %c0_33 = arith.constant 0 : index
      %c0_34 = arith.constant 0 : index
      %63 = vector.load %arg14[%c0_33, %c0_34] : memref<8x32xf32, #tpu.memory_space<vmem>>, vector<8x32xf32>
      %c0_35 = arith.constant 0 : index
      %c0_36 = arith.constant 0 : index
      %64 = vector.load %arg12[%c0_35, %c0_36] : memref<1x32xf32, #tpu.memory_space<vmem>>, vector<1x32xf32>
      %65 = vector.broadcast %64 : vector<1x32xf32> to vector<8x32xf32>
      %66 = arith.addf %63, %65 : vector<8x32xf32>
      %c0_37 = arith.constant 0 : index
      %c0_38 = arith.constant 0 : index
      %c0_39 = arith.constant 0 : index
      %67 = vector.load %arg13[%c0_37, %c0_38, %c0_39] : memref<1x8x32xf32, #tpu.memory_space<vmem>>, vector<1x8x32xf32>
      %68 = vector.shape_cast %67 : vector<1x8x32xf32> to vector<8x32xf32>
      %69 = vector.shape_cast %66 : vector<8x32xf32> to vector<1x8x32xf32>
      tpu.vector_store %arg13[%c0_37, %c0_38, %c0_39], %69 {strides = array<i32>} : memref<1x8x32xf32, #tpu.memory_space<vmem>>, vector<1x8x32xf32>,
    } else {
    }
    return
  }
  func.func @transform_0(%arg0: i32, %arg1: i32, %arg2: i32) -> (i32, i32, i32) {
    %c0_i32 = arith.constant 0 : i32
    %c0_i32_0 = arith.constant 0 : i32
    return %arg0, %arg1, %c0_i32 : i32, i32, i32
  }
  func.func @transform_1(%arg0: i32, %arg1: i32, %arg2: i32) -> (i32, i32, i32) {
    %c0_i32 = arith.constant 0 : i32
    %c0_i32_0 = arith.constant 0 : i32
    %c0_i32_1 = arith.constant 0 : i32
    return %arg0, %c0_i32, %c0_i32_0 : i32, i32, i32
  }
  func.func @transform_2(%arg0: i32, %arg1: i32, %arg2: i32) -> (i32, i32, i32) {
    %c0_i32 = arith.constant 0 : i32
    %c0_i32_0 = arith.constant 0 : i32
    %c0_i32_1 = arith.constant 0 : i32
    %c0_i32_2 = arith.constant 0 : i32
    return %c0_i32, %c0_i32_0, %c0_i32_1 : i32, i32, i32
  }
  func.func @transform_3(%arg0: i32, %arg1: i32, %arg2: i32) -> (i32, i32, i32) {
    %c0_i32 = arith.constant 0 : i32
    %c0_i32_0 = arith.constant 0 : i32
    %c0_i32_1 = arith.constant 0 : i32
    %c0_i32_2 = arith.constant 0 : i32
    return %c0_i32, %c0_i32_0, %c0_i32_1 : i32, i32, i32
  }
  func.func @transform_4(%arg0: i32, %arg1: i32, %arg2: i32) -> (i32, i32, i32) {
    %c0_i32 = arith.constant 0 : i32
    %c0_i32_0 = arith.constant 0 : i32
    %c0_i32_1 = arith.constant 0 : i32
    %c0_i32_2 = arith.constant 0 : i32
    return %c0_i32, %c0_i32_0, %c0_i32_1 : i32, i32, i32
  }
  func.func @transform_5(%arg0: i32, %arg1: i32, %arg2: i32) -> (i32, i32, i32) {
    %c0_i32 = arith.constant 0 : i32
    %c0_i32_0 = arith.constant 0 : i32
    %c0_i32_1 = arith.constant 0 : i32
    %c0_i32_2 = arith.constant 0 : i32
    return %c0_i32, %c0_i32_0, %c0_i32_1 : i32, i32, i32
  }
  func.func @transform_6(%arg0: i32, %arg1: i32, %arg2: i32) -> (i32, i32, i32) {
    %c0_i32 = arith.constant 0 : i32
    %c0_i32_0 = arith.constant 0 : i32
    %c0_i32_1 = arith.constant 0 : i32
    %c0_i32_2 = arith.constant 0 : i32
    return %c0_i32, %c0_i32_0, %c0_i32_1 : i32, i32, i32
  }
  func.func @transform_7(%arg0: i32, %arg1: i32, %arg2: i32) -> (i32, i32, i32) {
    %c0_i32 = arith.constant 0 : i32
    %c0_i32_0 = arith.constant 0 : i32
    %c0_i32_1 = arith.constant 0 : i32
    %c0_i32_2 = arith.constant 0 : i32
    return %c0_i32, %c0_i32_0, %c0_i32_1 : i32, i32, i32
  }
  func.func @transform_8(%arg0: i32, %arg1: i32, %arg2: i32) -> (i32, i32, i32) {
    %c0_i32 = arith.constant 0 : i32
    %c0_i32_0 = arith.constant 0 : i32
    %c0_i32_1 = arith.constant 0 : i32
    %c0_i32_2 = arith.constant 0 : i32
    return %c0_i32, %c0_i32_0, %c0_i32_1 : i32, i32, i32
  }
  func.func @transform_9(%arg0: i32, %arg1: i32, %arg2: i32) -> (i32, i32) {
    %c0_i32 = arith.constant 0 : i32
    %c0_i32_0 = arith.constant 0 : i32
    %c0_i32_1 = arith.constant 0 : i32
    return %c0_i32, %c0_i32_0 : i32, i32
  }
  func.func @transform_10(%arg0: i32, %arg1: i32, %arg2: i32) -> (i32, i32, i32) {
    %c0_i32 = arith.constant 0 : i32
    %c0_i32_0 = arith.constant 0 : i32
    return %arg0, %arg1, %c0_i32 : i32, i32, i32
  }
}

</mosaic_0001>

<bundles_post_ra>
// kernel: tpu_custom_call.1
= control target key start
LH: loop header
LB: loop body
LE: loop exit
PB: predicated region body
PF: predicated region fallthrough
CT: control target
= control target key end

     0   :  { %s2233_s0 = inlined_call_operand.vmem [shape: f32[2,8,32], index: 0, kind: input, shape index: {}]   ;;  %s2234_s1 = inlined_call_operand.vmem [shape: f32[2,128,16], index: 1, kind: input, shape index: {}]   ;;  %s2235_s2 = inlined_call_operand.vmem [shape: f32[4,32,8], index: 2, kind: input, shape index: {}]   ;;  %s2236_s3 = inlined_call_operand.vmem [shape: f32[4,1,8], index: 3, kind: input, shape index: {}]   ;;  %s2237_s4 = inlined_call_operand.vmem [shape: f32[4,16,8], index: 4, kind: input, shape index: {}]   ;;  %s2238_s5 = inlined_call_operand.vmem [shape: f32[4,1,8], index: 5, kind: input, shape index: {}]   ;;  %s2239_s6 = inlined_call_operand.vmem [shape: f32[4,16,8], index: 6, kind: input, shape index: {}]   ;;  %s2240_s7 = inlined_call_operand.vmem [shape: f32[4,1,8], index: 7, kind: input, shape index: {}]   ;;  %s2241_s8 = inlined_call_operand.vmem [shape: f32[4,8,32], index: 8, kind: input, shape index: {}]   ;;  %s2242_s9 = inlined_call_operand.vmem [shape: f32[1,32], index: 9, kind: input, shape index: {}]   ;;  %s2243_s10 = inlined_call_operand.hbm [shape: f32[2,8,32], index: 10, kind: output, shape index: {}]  }
   0x1   :  { %2246 = sst [smem:[#allocation7_spill]] %s2233_s0 }
   0x2   :  { %2247 = sst [smem:[#allocation8_spill]] %s2234_s1 }
   0x3   :  { %2248 = sst [smem:[#allocation9_spill]] %s2237_s4 }
   0x4   :  { %15 = vsyncpa [#allocation4], 0 }
   0x5   :  { %17 = vsyncpa [#allocation4 + $0x1], 0  ;;  %s1892_s13 = smov 0   ;;  %s1894_s14 = smov 0  }
   0x6   :  { %s1896_s15 = smov 0   ;;  %s1898_s16 = smov 0  }
   0x7   :  { %s1900_s17 = smov 0   ;;  %s1902_s18 = smov 0  }
   0x8   :  { %s1904_s19 = smov 0   ;;  %s1906_s20 = smov 0  }
   0x9 LB: > { %s1294_s21 = sadd.s32 4294967295, %s1830_s20   ;;  %s1295_s22 = sadd.s32 4294967294, %s1830_s20   ;;  %s1830_s20 = sphi %s1906_s20, %s23_s20   ;;  %s1826_s19 = sphi %s1904_s19, %s2265_s19   ;;  %s1822_s18 = sphi %s1902_s18, %s2264_s18   ;;  %s1818_s17 = sphi %s1900_s17, %s2263_s17   ;;  %s1814_s16 = sphi %s1898_s16, %s2262_s16   ;;  %s1810_s15 = sphi %s1896_s15, %s2261_s15   ;;  %s1806_s14 = sphi %s1894_s14, %s2260_s14   ;;  %s1802_s13 = sphi %s1892_s13, %s2259_s13  }
   0xa   : > { %s35_s23 = sadd.s32 1, %s1822_s18  ;;  %s42_s24 = sadd.s32 1, %s1826_s19 }
   0xb   : > { %p36_p0 = scmp.ge.s32.totalorder %s35_s23, 4  ;;  %p283_p1 = scmp.ne.s32.totalorder %s1810_s15, %s1806_s14 }
   0xc   : > { %p284_p2 = scmp.eq.s32.totalorder %s1294_s21, 7  ;;  %p289_p4 = scmp.ne.s32.totalorder %s1806_s14, %s1802_s13 }
   0xd   : > { %s2267_s23 = smov (%p36_p0, %s35_s23), 0  ;;  %s2269_s24 = smov (!%p36_p0, %s42_s24), %s1826_s19 }
   0xe   : > { %p1941_p3 = por %p284_p2, %p283_p1  ;;  %p44_p5 = scmp.ge.s32.totalorder %s2269_s24, 2 }
   0xf   : > { %p290_p6 = scmp.eq.s32.totalorder %s1295_s22, 7  ;;  %p1298_p7 = scmp.ge.s32.totalorder %s1830_s20, 1 }
  0x10   : > { %p350_p8 = scmp.lt.s32.totalorder %s1830_s20, 9  ;;  %s2271_s24 = smov (%p44_p5, %s2269_s24), 0 }
  0x11   : > { %2250 = sst [smem:[#allocation6_spill]] %s2271_s24  ;;  %p1951_p9 = por %p290_p6, %p289_p4 }
  0x12   : > { %p351_p10 = pnand %p1298_p7, %p350_p8  ;;  %s268_s27 = ssub.s32 %s1826_s19, %s2271_s24 }
  0x13   : > { %s273_s28 = sadd.s32 1, %s1810_s15  ;;  %p271_p11 = scmp.eq.s32.totalorder %s268_s27, 0  ;;  %v1832_v0 = vmov (!%p351_p10), 0.0|0.0   ;;  %vm1833_vm0 = vmmov (!%p351_p10), 0   ;;  %v1834_v1 = vmov (!%p351_p10), 0.0   ;;  %vm524_vm1 = vcmask (!%p351_p10), 130048  }
  0x14   : > { %354 = sbr.rel (%p351_p10) target bundleno = 1307 (0x51b), region = 60  ;;  %s2245_s30 = sshll.u32 (!%p351_p10), %s1814_s16, 4  ;;  %1587 = vmatprep.subr.bf16.mxu0 (!%p351_p10), %v1832_v0  ;;  %1453 = vmatprep.mubr.msk.f32.mxu0 (!%p351_p10), %vm1833_vm0, %v1834_v1  ;;  %vm438_vm2 = vcmask (!%p351_p10), 261120   ;;  %vm874_vm3 = vcmask (!%p351_p10), 64512  }
  0x15   : > { %s1959_s29 = scalar_select %p271_p11, %s1810_s15, %s273_s28  }
  0x16   : > { %p395_p12 = scmp.lt.s32.totalorder (!%p351_p10), %s1818_s17, 1  ;;  %s2252_s4 = sld [smem:[#allocation9_spill]] (!%p351_p10)  ;;  %vm2082_vm4 = vmpackc.low (!%p351_p10), %vm874_vm3, %vm874_vm3 }
  0x17   : > { %s392_s27 = sand.u32 (!%p351_p10), 1, %s1806_s14   ;;  %s1303_s28 = sshll.u32 (!%p351_p10), %s1814_s16, 5 }
  0x18   : > { %s1979_s11 = sshll.u32 (!%p351_p10), %s392_s27, 3  ;;  %s2253_s1 = sld [smem:[#allocation8_spill]] (!%p351_p10) }
  0x19   : > { %s2254_s0 = sld [smem:[#allocation7_spill]] (!%p351_p10)  ;;  %p1358_p13 = scmp.ne.s32.totalorder (!%p351_p10), %s1814_s16, 0 }
  0x1b   : > { %s1972_s22 = scalar_select %p395_p12, %s1818_s17, 1 }
  0x1c   : > { %s513_s21 = scalar_lea.vmem %s2252_s4, %s2245_s30  ;;  %s430_s30 = scalar_lea.vmem %s2236_s3, %s1814_s16 }
  0x1d   : > { %v514_v2 = vld [vmem:[%s513_s21] sm:$0xff]  ;;  %v515_v3 = vld [vmem:[%s513_s21 + $0x8] sm:$0xff]  ;;  %s1367_s24 = sshll.u32 %s1972_s22, 7  ;;  %s425_s21 = scalar_lea.vmem %s2235_s2, %s1303_s28 }
  0x1e   : > { %v1593_v4 = vpack.c.bf16 %v515_v3, %v514_v2  ;;  %s1984_s4 = scalar_lea.vmem %s2253_s1, %s1367_s24  ;;  %v426_v10 = vld [vmem:[%s425_s21] sm:$0xff]  ;;  %v427_v11 = vld [vmem:[%s425_s21 + $0x8] sm:$0xff]  ;;  %v428_v13 = vld [vmem:[%s425_s21 + $0x10] sm:$0xff]  ;;  %s1300_s12 = sshll.u32 %s1972_s22, 3 }
  0x1f   : > { %v408_v5 = vld [vmem:[%s1984_s4] sm:$0xff]  ;;  %v1988_v6 = vld [vmem:[%s1984_s4 + $0x8] sm:$0xff]  ;;  %v1992_v7 = vld [vmem:[%s1984_s4 + $0x10] sm:$0xff]  ;;  %v1588_v12 = vpack.c.bf16 %v427_v11, %v426_v10  ;;  %s401_s22 = scalar_lea.vmem %s2254_s0, %s1300_s12  ;;  %s516_s12 = scalar_lea.vmem %s2238_s5, %s1814_s16 }
  0x20   : > { %1594 = vmatprep.subr.bf16.mxu1 %v1593_v4  ;;  %1460 = vmatprep.mubr.msk.f32.mxu1 %vm524_vm1, %v408_v5  ;;  %v2003_v8 = vld [vmem:[%s1984_s4 + $0x18] sm:$0xff]  ;;  %v2006_v9 = vld [vmem:[%s1984_s4 + $0x20] sm:$0xff]  ;;  %v2014_v15 = vld [vmem:[%s1984_s4 + $0x28] sm:$0xff] }
  0x21   : > { %1596 = vmatpush3.bf16.msra.mxu1 %v1593_v4  ;;  %v429_v14 = vld [vmem:[%s425_s21 + $0x18] sm:$0xff]  ;;  %1589 = vmatpush3.bf16.msra.mxu0 %v1588_v12  ;;  %v2017_v17 = vld [vmem:[%s1984_s4 + $0x30] sm:$0xff]  ;;  %v407_v19 = vld [vmem:[%s401_s22] sm:$0xff]  ;;  %s2257_s22 = sshll.u32 %s1814_s16, 4 }
  0x22   : > { %1601 = vmatprep.subr.bf16.mxu1 %v1832_v0  ;;  %v1591_v16 = vpack.c.bf16 %v429_v14, %v428_v13  ;;  %1590 = vmatprep.subr.bf16.mxu0 %v1832_v0  ;;  %v2028_v18 = vld [vmem:[%s1984_s4 + $0x38] sm:$0xff]  ;;  %v2031_v20 = vld [vmem:[%s1984_s4 + $0x40] sm:$0xff]  ;;  %v2039_v21 = vld [vmem:[%s1984_s4 + $0x48] sm:$0xff] }
  0x23   : > { %v2043_v22 = vld [vmem:[%s1984_s4 + $0x50] sm:$0xff]  ;;  %v2050_v23 = vld [vmem:[%s1984_s4 + $0x58] sm:$0xff]  ;;  %v2053_v24 = vld [vmem:[%s1984_s4 + $0x60] sm:$0xff] }
  0x24   : > { %1461 = vmatmul.mubr.msk.f32.vlgmr.msra.gmra.mrb[0].mxu1 %vm524_vm1, %v1988_v6  ;;  %v2060_v25 = vld [vmem:[%s1984_s4 + $0x68] sm:$0xff]  ;;  %v2063_v26 = vld [vmem:[%s1984_s4 + $0x70] sm:$0xff]  ;;  %v2070_v27 = vld [vmem:[%s1984_s4 + $0x78] sm:$0xff] }
  0x25   : > { %1463 = vmatprep.mubr.msk.f32.mxu1 %vm524_vm1, %v1992_v7  ;;  %1592 = vmatpush3.bf16.msra.mxu0 %v1591_v16  ;;  %v1307_v28 = vld [vmem:[%s516_s12] ss:$0 sm:$0xff]  ;;  %s718_s12 = scalar_lea.vmem %s2239_s6, %s2257_s22  ;;  %s394_s22 = scalar_lea.vmem [#allocation3], %s1979_s11 }
  0x26   : > { %v1304_v14 = vld [vmem:[%s430_s30] ss:$0 sm:$0xff]  ;;  %s721_s30 = scalar_lea.vmem %s2240_s7, %s1814_s16 }
  0x28   : > { %1464 = vmatmul.mubr.msk.f32.gmra.mrb[2].mxu1 %vm524_vm1, %v2003_v8  ;;  %1454 = vmatmul.mubr.msk.f32.vlgmr.msra.gmra.mrb[0].mxu0 %vm438_vm2, %v407_v19  ;;  %v719_v19 = vld [vmem:[%s718_s12] sm:$0xff] }
  0x29   : > { %1466 = vmatprep.mubr.msk.f32.mxu1 %vm524_vm1, %v2006_v9  ;;  %1488 = vmatprep.mubr.msk.f32.mxu0 %vm524_vm1, %v408_v5 }
  0x2c   : > { %1467 = vmatmul.mubr.msk.f32.gmra.mrb[4].mxu1 %vm524_vm1, %v2014_v15 }
  0x2d   : > { %1469 = vmatprep.mubr.msk.f32.mxu1 %vm524_vm1, %v2017_v17 }
  0x30   : > { %1470 = vmatmul.mubr.msk.f32.gmra.mrb[6].mxu1 %vm524_vm1, %v2028_v18 }
  0x31   : > { %1472 = vmatprep.mubr.msk.f32.mxu1 %vm524_vm1, %v2031_v20 }
  0x34   : > { %1473 = vmatmul.mubr.msk.f32.gmra.mrb[8].mxu1 %vm524_vm1, %v2039_v21 }
  0x35   : > { %1475 = vmatprep.mubr.msk.f32.mxu1 %vm524_vm1, %v2043_v22 }
  0x38   : > { %1476 = vmatmul.mubr.msk.f32.gmra.mrb[10].mxu1 %vm524_vm1, %v2050_v23 }
  0x39   : > { %1478 = vmatprep.mubr.msk.f32.mxu1 %vm524_vm1, %v2053_v24 }
  0x3c   : > { %1479 = vmatmul.mubr.msk.f32.gmra.mrb[12].mxu1 %vm524_vm1, %v2060_v25 }
  0x3d   : > { %1481 = vmatprep.mubr.msk.f32.mxu1 %vm524_vm1, %v2063_v26 }
  0x40   : > { %1482 = vmatmul.mubr.msk.f32.gmra.mrb[14].mxu1 %vm524_vm1, %v2070_v27 }
  0x41   : > { %1544 = vmatprep.mubr.msk.f32.mxu1 %vm1833_vm0, %v1834_v1 }
  0xf7   : > { %v1462_v29 = vpop.f32.mrb[0].mxu1 }
  0xf8   : > { %v645_v30 = vadd.f32 %v1462_v29, %v1307_v28  ;;  %v639_v31 = vpop.f32.mrb[1].mxu1 }
  0xf9   : > { %v640_v32 = vadd.f32 %v1307_v28, %v639_v31 }
  0xfb   : > { %v1602_v34 = vpack.c.bf16 %v645_v30, %v640_v32  ;;  %v1465_v35 = vpop.f32.mrb[2].mxu1  ;;  %v508_v46 = vpop.f32.mrb[0].mxu0 }
  0xfc   : > { %v655_v36 = vadd.f32 %v1465_v35, %v1307_v28  ;;  %v649_v37 = vpop.f32.mrb[3].mxu1  ;;  %v1455_v49 = vpop.f32.mrb[1].mxu0  ;;  %v509_v16 = vadd.f32 %v1304_v14, %v508_v46 }
  0xfd   : > { %1604 = vmatpush3.bf16.xpose.msk.msra.mxu1 %vm2082_vm4, %v1602_v34  ;;  %v650_v38 = vadd.f32 %v1307_v28, %v649_v37 }
  0xfe   : > { %1605 = vmatprep.subr.bf16.mxu1 %v1832_v0 }
  0xff   : > { %v1606_v39 = vpack.c.bf16 %v655_v36, %v650_v38  ;;  %v1468_v40 = vpop.f32.mrb[4].mxu1 }
 0x100   : > { %v665_v41 = vadd.f32 %v1468_v40, %v1307_v28  ;;  %v659_v42 = vpop.f32.mrb[5].mxu1 }
 0x101   : > { %v660_v43 = vadd.f32 %v1307_v28, %v659_v42 }
 0x103   : > { %v1610_v44 = vpack.c.bf16 %v665_v41, %v660_v43  ;;  %v1471_v45 = vpop.f32.mrb[6].mxu1 }
 0x104   : > { %v675_v47 = vadd.f32 %v1471_v45, %v1307_v28  ;;  %v669_v48 = vpop.f32.mrb[7].mxu1 }
 0x105   : > { %1608 = vmatpush3.bf16.xpose.msk.msra.mxu1 %vm2082_vm4, %v1606_v39  ;;  %v670_v50 = vadd.f32 %v1307_v28, %v669_v48 }
 0x106   : > { %1609 = vmatprep.subr.bf16.mxu1 %v1832_v0 }
 0x107   : > { %v1614_v51 = vpack.c.bf16 %v675_v47, %v670_v50  ;;  %v1474_v52 = vpop.f32.mrb[8].mxu1 }
 0x108   : > { %v685_v53 = vadd.f32 %v1474_v52, %v1307_v28  ;;  %v679_v54 = vpop.f32.mrb[9].mxu1 }
 0x109   : > { %v680_v55 = vadd.f32 %v1307_v28, %v679_v54 }
 0x10b   : > { %v1618_v56 = vpack.c.bf16 %v685_v53, %v680_v55  ;;  %v1477_v57 = vpop.f32.mrb[10].mxu1 }
 0x10c   : > { %v695_v58 = vadd.f32 %v1477_v57, %v1307_v28  ;;  %v689_v59 = vpop.f32.mrb[11].mxu1 }
 0x10d   : > { %1612 = vmatpush3.bf16.xpose.msk.msra.mxu1 %vm2082_vm4, %v1610_v44  ;;  %v690_v60 = vadd.f32 %v1307_v28, %v689_v59 }
 0x10e   : > { %1613 = vmatprep.subr.bf16.mxu1 %v1832_v0 }
 0x10f   : > { %v1622_v61 = vpack.c.bf16 %v695_v58, %v690_v60  ;;  %v1480_v62 = vpop.f32.mrb[12].mxu1 }
 0x110   : > { %v705_v63 = vadd.f32 %v1480_v62, %v1307_v28  ;;  %v699_v2 = vpop.f32.mrb[13].mxu1 }
 0x111   : > { %v700_v3 = vadd.f32 %v1307_v28, %v699_v2 }
 0x113   : > { %v1626_v4 = vpack.c.bf16 %v705_v63, %v700_v3  ;;  %v1483_v5 = vpop.f32.mrb[14].mxu1 }
 0x114   : > { %v715_v10 = vadd.f32 %v1483_v5, %v1307_v28  ;;  %v709_v11 = vpop.f32.mrb[15].mxu1 }
 0x115   : > { %1616 = vmatpush3.bf16.xpose.msk.msra.mxu1 %vm2082_vm4, %v1614_v51  ;;  %v710_v12 = vadd.f32 %v1307_v28, %v709_v11  ;;  %v720_v28 = vld [vmem:[%s718_s12 + $0x8] sm:$0xff] }
 0x116   : > { %1617 = vmatprep.subr.bf16.mxu1 %v1832_v0  ;;  %v1597_v29 = vpack.c.bf16 %v720_v28, %v719_v19 }
 0x117   : > { %v1630_v13 = vpack.c.bf16 %v715_v10, %v710_v12  ;;  %v1835_v12 = vmov (!%p1358_p13), 0.0  }
 0x118   : > { %1598 = vmatprep.subr.bf16.mxu0 %v1597_v29  ;;  %1085 = vst.msk [vmem:[#allocation2] sm:$0xff] (!%p1358_p13), %vm438_vm2, %v1835_v12 }
 0x119   : > { %1600 = vmatpush3.bf16.msra.mxu0 %v1597_v29 }
 0x11a   : > { %1633 = vmatprep.subr.bf16.mxu0 %v1832_v0 }
 0x11c   : > { %1489 = vmatmul.mubr.msk.f32.vlgmr.msra.gmra.mrb[2].mxu0 %vm524_vm1, %v1988_v6  ;;  %v996_v6 = vlaneseq }
 0x11d   : > { %1620 = vmatpush3.bf16.xpose.msk.msra.mxu1 %vm2082_vm4, %v1618_v56  ;;  %1491 = vmatprep.mubr.msk.f32.mxu0 %vm524_vm1, %v1992_v7 }
 0x11e   : > { %1621 = vmatprep.subr.bf16.mxu1 %v1832_v0  ;;  %v997_v7 = vand.u32 127, %v996_v6 }
 0x120   : > { %1492 = vmatmul.mubr.msk.f32.gmra.mrb[4].mxu0 %vm524_vm1, %v2003_v8  ;;  %vm998_vm5 = vcmp.lt.s32.totalorder %v997_v7, 8 }
 0x121   : > { %1494 = vmatprep.mubr.msk.f32.mxu0 %vm524_vm1, %v2006_v9 }
 0x124   : > { %1495 = vmatmul.mubr.msk.f32.gmra.mrb[6].mxu0 %vm524_vm1, %v2014_v15 }
 0x125   : > { %1624 = vmatpush3.bf16.xpose.msk.msra.mxu1 %vm2082_vm4, %v1622_v61  ;;  %1497 = vmatprep.mubr.msk.f32.mxu0 %vm524_vm1, %v2017_v17  ;;  %v1324_v17 = vld [vmem:[%s721_s30] ss:$0 sm:$0xff] }
 0x126   : > { %1625 = vmatprep.subr.bf16.mxu1 %v1832_v0 }
 0x128   : > { %1498 = vmatmul.mubr.msk.f32.gmra.mrb[8].mxu0 %vm524_vm1, %v2028_v18 }
 0x129   : > { %1500 = vmatprep.mubr.msk.f32.mxu0 %vm524_vm1, %v2031_v20 }
 0x12c   : > { %1501 = vmatmul.mubr.msk.f32.gmra.mrb[10].mxu0 %vm524_vm1, %v2039_v21 }
 0x12d   : > { %1628 = vmatpush3.bf16.xpose.msk.msra.mxu1 %vm2082_vm4, %v1626_v4  ;;  %1503 = vmatprep.mubr.msk.f32.mxu0 %vm524_vm1, %v2043_v22 }
 0x12e   : > { %1629 = vmatprep.subr.bf16.mxu1 %v1832_v0 }
 0x130   : > { %1504 = vmatmul.mubr.msk.f32.gmra.mrb[12].mxu0 %vm524_vm1, %v2050_v23 }
 0x131   : > { %1506 = vmatprep.mubr.msk.f32.mxu0 %vm524_vm1, %v2053_v24 }
 0x134   : > { %1507 = vmatmul.mubr.msk.f32.gmra.mrb[14].mxu0 %vm524_vm1, %v2060_v25 }
 0x135   : > { %1632 = vmatpush3.bf16.xpose.msk.msra.mxu1 %vm2082_vm4, %v1630_v13  ;;  %1509 = vmatprep.mubr.msk.f32.mxu0 %vm524_vm1, %v2063_v26 }
 0x138   : > { %1510 = vmatmul.mubr.msk.f32.gmra.mrb[16].mxu0 %vm524_vm1, %v2070_v27 }
 0x139   : > { %1579 = vmatprep.mubr.msk.f32.mxu0 %vm1833_vm0, %v1834_v1 }
 0x13c   : > { %1545 = vmatmul.mubr.msk.f32.vlgmr.msra.gmra.mrb[16].mxu1 %vm874_vm3, %v509_v16 }
 0x1ef   : > { %v1490_v18 = vpop.f32.mrb[2].mxu0 }
 0x1f0   : > { %v801_v20 = vadd.f32 %v1490_v18, %v1324_v17  ;;  %v795_v21 = vpop.f32.mrb[3].mxu0 }
 0x1f1   : > { %v796_v22 = vadd.f32 %v1324_v17, %v795_v21 }
 0x1f3   : > { %v1634_v23 = vpack.c.bf16 %v801_v20, %v796_v22  ;;  %v1493_v24 = vpop.f32.mrb[4].mxu0 }
 0x1f4   : > { %v811_v25 = vadd.f32 %v1493_v24, %v1324_v17  ;;  %v805_v26 = vpop.f32.mrb[5].mxu0 }
 0x1f5   : > { %v806_v27 = vadd.f32 %v1324_v17, %v805_v26  ;;  %1635 = vmatpush3.bf16.msra.mxu0 %v1634_v23 }
 0x1f6   : > { %1636 = vmatprep.subr.bf16.mxu0 %v1832_v0 }
 0x1f7   : > { %v1637_v30 = vpack.c.bf16 %v811_v25, %v806_v27  ;;  %v1496_v31 = vpop.f32.mrb[6].mxu0 }
 0x1f8   : > { %v821_v32 = vadd.f32 %v1496_v31, %v1324_v17  ;;  %v815_v33 = vpop.f32.mrb[7].mxu0 }
 0x1f9   : > { %v816_v34 = vadd.f32 %v1324_v17, %v815_v33  ;;  %1638 = vmatpush3.bf16.msra.mxu0 %v1637_v30 }
 0x1fa   : > { %1639 = vmatprep.subr.bf16.mxu0 %v1832_v0 }
 0x1fb   : > { %v1640_v35 = vpack.c.bf16 %v821_v32, %v816_v34  ;;  %v1499_v36 = vpop.f32.mrb[8].mxu0 }
 0x1fc   : > { %v831_v37 = vadd.f32 %v1499_v36, %v1324_v17  ;;  %v825_v38 = vpop.f32.mrb[9].mxu0 }
 0x1fd   : > { %v826_v39 = vadd.f32 %v1324_v17, %v825_v38  ;;  %1641 = vmatpush3.bf16.msra.mxu0 %v1640_v35 }
 0x1fe   : > { %1642 = vmatprep.subr.bf16.mxu0 %v1832_v0 }
 0x1ff   : > { %v1643_v40 = vpack.c.bf16 %v831_v37, %v826_v39  ;;  %v1502_v41 = vpop.f32.mrb[10].mxu0 }
 0x200   : > { %v841_v42 = vadd.f32 %v1502_v41, %v1324_v17  ;;  %v835_v43 = vpop.f32.mrb[11].mxu0 }
 0x201   : > { %v836_v44 = vadd.f32 %v1324_v17, %v835_v43  ;;  %1644 = vmatpush3.bf16.msra.mxu0 %v1643_v40 }
 0x202   : > { %1645 = vmatprep.subr.bf16.mxu0 %v1832_v0 }
 0x203   : > { %v1646_v45 = vpack.c.bf16 %v841_v42, %v836_v44  ;;  %v1505_v46 = vpop.f32.mrb[12].mxu0 }
 0x204   : > { %v851_v47 = vadd.f32 %v1505_v46, %v1324_v17  ;;  %v845_v48 = vpop.f32.mrb[13].mxu0 }
 0x205   : > { %v846_v49 = vadd.f32 %v1324_v17, %v845_v48  ;;  %1647 = vmatpush3.bf16.msra.mxu0 %v1646_v45 }
 0x206   : > { %1648 = vmatprep.subr.bf16.mxu0 %v1832_v0 }
 0x207   : > { %v1649_v50 = vpack.c.bf16 %v851_v47, %v846_v49  ;;  %v1508_v51 = vpop.f32.mrb[14].mxu0 }
 0x208   : > { %v861_v56 = vadd.f32 %v1508_v51, %v1324_v17  ;;  %v855_v57 = vpop.f32.mrb[15].mxu0 }
 0x209   : > { %1650 = vmatpush3.bf16.msra.mxu0 %v1649_v50  ;;  %v856_v58 = vadd.f32 %v1324_v17, %v855_v57 }
 0x20a   : > { %1651 = vmatprep.subr.bf16.mxu0 %v1832_v0 }
 0x20b   : > { %v1652_v59 = vpack.c.bf16 %v861_v56, %v856_v58  ;;  %v1511_v60 = vpop.f32.mrb[16].mxu0 }
 0x20c   : > { %v865_v61 = vpop.f32.mrb[17].mxu0  ;;  %v871_v62 = vadd.f32 %v1511_v60, %v1324_v17 }
 0x20d   : > { %v866_v63 = vadd.f32 %v1324_v17, %v865_v61  ;;  %1653 = vmatpush3.bf16.msra.mxu0 %v1652_v59 }
 0x20e   : > { %1654 = vmatprep.subr.bf16.mxu0 %v1832_v0 }
 0x20f   : > { %v992_v8 = vpop.f32.mrb[16].mxu1  ;;  %v1655_v2 = vpack.c.bf16 %v871_v62, %v866_v63 }
 0x210   : > { %v1546_v9 = vpop.f32.mrb[17].mxu1  ;;  %v1001_v15 = vsel %vm998_vm5, %v992_v8, -1e+30 }
 0x211   : > { %1002 = vmax.xlane.f32.xlu0 %v1001_v15  ;;  %1656 = vmatpush3.bf16.msra.mxu0 %v1655_v2 }
 0x29e   : > { %v1003_v52 = vpop.xlane.xlu0 %1002 }
 0x29f   : > { %v1004_v53 = vsub.f32 %v1001_v15, %v1003_v52 }
 0x2a1   : > { %v1005_v54 = vmul.f32 1.442695, %v1004_v53 }
 0x2a3   : > { %1732 = vpow2.f32 %v1005_v54 }
 0x2ad   : > { %v1733_v55 = vpop.eup %1732 }
 0x2ae   : > { %1007 = vadd.xlane.f32.xlu0 %v1733_v55 }
 0x33b   : > { %v1008_v3 = vpop.xlane.xlu0 %1007 }
 0x33c   : > { %1734 = vrcp.f32 %v1008_v3 }
 0x346   : > { %v1735_v4 = vpop.eup %1734 }
 0x347   : > { %v1010_v5 = vmul.f32 %v1735_v4, %v1733_v55 }
 0x349   : > { %1580 = vmatmul.mubr.f32.vlgmr.msra.gmra.mrb[18].mxu0 %v1010_v5 }
 0x417   : > { %1084 = sbr.rel (%p1358_p13) target bundleno = 1054 (0x41e), region = 64 }
 0x41c   : > { %v1077_v10 = vpop.f32.mrb[18].mxu0 }
 0x41d   : > { %v1581_v11 = vpop.f32.mrb[19].mxu0 }
 0x41e PF: > { %1582 = vmatprep.subr.mxu0 %v1834_v1  ;;  %s1359_s24 = sshll.u32 %s1814_s16, 3  ;;  %1584 = vmatprep.mubr.msk.f32.mxu0 %vm1833_vm0, %v1834_v1  ;;  %v1086_v13 = vld [vmem:[#allocation2] sm:$0xff]  ;;  %p1361_p0 = scmp.ne.s32.totalorder %s1814_s16, 3 }
 0x41f   : > { %s1088_s4 = scalar_lea.vmem %s2241_s8, %s1359_s24  ;;  %v1362_v1 = vld [vmem:[%s2242_s9] ss:$0 sm:$0xff] (!%p1361_p0) }
 0x420   : > { %v1089_v0 = vld [vmem:[%s1088_s4] sm:$0xff] }
 0x421   : > { %1583 = vmatpush3.msra.mxu0 %v1089_v0 }
 0x422   : > { %1585 = vmatmul.mubr.msk.f32.vlgmr.msra.gmra.mrb[20].mxu0 %vm874_vm3, %v1077_v10 }
 0x4f2   : > { %1168 = sbr.rel (%p1361_p0) target bundleno = 1283 (0x503), region = 68 }
 0x4f5   : > { %v1159_v14 = vpop.f32.mrb[20].mxu0 }
 0x4f6   : > { %v1163_v16 = vadd.f32 %v1159_v14, %v1086_v13  ;;  %v1586_v19 = vpop.f32.mrb[21].mxu0 }
 0x4f8   : > { %1164 = vst.msk [vmem:[#allocation2] sm:$0xff] %vm438_vm2, %v1163_v16 }
 0x4ff   : > { %v1169_v28 = vld [vmem:[#allocation2] sm:$0xff] }
 0x500   : > { %v1177_v29 = vadd.f32 %v1362_v1, %v1169_v28 }
 0x502   : > { %1178 = vst.msk [vmem:[%s394_s22] sm:$0xff] %vm438_vm2, %v1177_v29 }
 0x503 PF: > { %s1364_s30 = sshll.u32 %s1818_s17, 7  ;;  %s1194_s16 = sshll.u32 %s394_s22, 4  ;;  %s1195_s16 = int_to_ptr.vmem [resolvable:$true] %s1194_s16 }
 0x504   : > { %s2184_s12 = scalar_lea.hbm %s2243_s10, %s1364_s30  ;;  %s1180_s4 = scalar_lea.sflag [#allocation4], %s392_s27 }
 0x505   : > { %s1736_s0 = scalar_lea.vmem %s1195_s16, 128  ;;  %s1836_s11 = smov [#allocation3]  }
 0x506   : > { %p1737_p1 = scmp.ne.s32.totalorder %s1195_s16, %s1736_s0  ;;  %s1740_s28 = sshll.u32 %s1836_s11, 4  ;;  %s1741_s28 = int_to_ptr.vmem [resolvable:$false] %s1740_s28 }
 0x507   : > { %s1742_s1 = scalar_lea.vmem %s1741_s28, 256  ;;  %p1743_p5 = scmp.lt.s32.totalorder %s1195_s16, %s1741_s28 }
 0x508   : > { %p1738_p2 = pnand %p1737_p1, %p1941_p3  ;;  %p1744_p6 = scmp.lt.s32.totalorder %s1742_s1, %s1736_s0 }
 0x50a   : > { %p1739_p4 = pneg %p1738_p2  ;;  %p1745_p7 = por %p1744_p6, %p1743_p5 }
 0x50c   : > { %p1746_p8 = pnand %p1745_p7, %p1739_p4 }
 0x50e   : > { %1749 = shalt.err (!%p1746_p8)
}
 0x50f   : > { %s1750_s17 = scalar_lea.hbm %s2184_s12, 128  ;;  %s1754_s30 = scalar_lea.hbm %s2243_s10, 256 }
 0x510   : > { %p1751_p10 = scmp.ne.s32.totalorder %s2184_s12, %s1750_s17  ;;  %p1755_p13 = scmp.lt.u32.totalorder %s2184_s12, %s2243_s10 }
 0x511   : > { %p1756_p0 = scmp.lt.u32.totalorder %s1754_s30, %s1750_s17  ;;  %p1758_p2 = scmp.lt.u32.totalorder %s1750_s17, %s2184_s12 }
 0x512   : > { %p1752_p11 = pnand %p1751_p10, %p1941_p3 }
 0x513   : > { %p1757_p1 = por %p1756_p0, %p1755_p13 }
 0x514   : > { %p1753_p12 = pneg %p1752_p11 }
 0x515   : > { %p1759_p4 = por %p1758_p2, %p1757_p1 }
 0x517   : > { %p1760_p5 = pnand %p1759_p4, %p1753_p12 }
 0x519   : > { %1763 = shalt.err (!%p1760_p5)
}
 0x51a   : > { %1657 = dma.vmem_to_hbm [thread:$0]  (%p1941_p3), %s1195_s16, 128, %s2184_s12, %s1180_s4  }
 0x51b PF: > { %p1663_p6 = scmp.ge.s32.totalorder %s1830_s20, 2  ;;  %s1206_s0 = sand.u32 1, %s1802_s13  }
 0x51c   : > { %s1207_s1 = scalar_lea.sflag [#allocation4], %s1206_s0 }
 0x51d   : > { %p1660_p7 = pnand %p1663_p6, %p1951_p9 }
 0x51f   : > { %1797 = dma.done.wait (!%p1660_p7), %s1207_s1, 128  }
 0x520   : > { %1799 = vsyncadd (!%p1660_p7), %s1207_s1, 4294967168  ;;  %s23_s20 = sadd.s32 1, %s1830_s20   ;;  %s2258_s25 = sld [smem:[#allocation6_spill]] }
 0x521   : > { %p20_p8 = scmp.ge.s32.totalorder %s23_s20, 10   ;;  %s2259_s13 = smov %s1806_s14 }
 0x522   : > { %s2260_s14 = smov %s1810_s15  ;;  %s2261_s15 = smov %s1959_s29 }
 0x523   : > { %s2262_s16 = smov %s1822_s18  ;;  %s2263_s17 = smov %s1826_s19 }
 0x524   : > { %s2264_s18 = smov %s2267_s23  ;;  %22 = sbr.rel (!%p20_p8) target bundleno = 9 (0x9), region = 113 }
 0x526   : > { %s2265_s19 = smov %s2258_s25 }
 0x52b   :  { %1212 = vsyncpa [#allocation4], 1 }
 0x52c   :  { %1214 = vsyncpa [#allocation4 + $0x1], 1 }

</bundles_post_ra>
